<compile_context>
chip_gen: v7x
topology: tpu7x:2x2x1
jax: 0.10.0
libtpu: 0.0.40
codegen_flags: <defaults>
</compile_context>

<pallas_src>
import functools

import numpy as np

import jax
import jax.numpy as jnp
from jax.experimental import pallas as pl
from jax.experimental.pallas import tpu as pltpu


# --------------------------------------------------------------------------- #
# Hardware-aware sizing helpers
# --------------------------------------------------------------------------- #
def _vmem_capacity_bytes():
    try:
        return int(pltpu.get_tpu_info().vmem_capacity_bytes)
    except Exception:
        return 64 * 1024 * 1024  # conservative (v7x-sized) default


def _default_block_elems():
    # >=512-wide tiles reach ~85% of HBM roofline; keep blocks smaller on
    # 64 MiB-VMEM parts (v7x), larger on 128 MiB parts (v5e/v6e).
    return 512 * 1024 if _vmem_capacity_bytes() >= (100 << 20) else 256 * 1024


def _num_tensorcores():
    """Cores the 'parallel' grid axes are sharded over (best-effort detection)."""
    try:
        kind = jax.local_devices()[0].device_kind.lower()
    except Exception:
        return 1
    return 2 if any(t in kind for t in ("v7", "v4", "v5p")) else 1


def _vmem_limit_bytes(bb, L, cb, itemsize):
    w_bytes = 2 * L * L * 4                      # W (conservatively 2 buffers)
    io_bytes = 3 * bb * L * cb * itemsize * 2    # x + 2 outputs, double-buffered
    tmp_bytes = 4 * L * cb * 4                   # per-series f32 temporaries
    req = int((w_bytes + io_bytes + tmp_bytes) * 1.5)
    ceiling = int(_vmem_capacity_bytes() * 0.9)  # never request beyond physical
    return int(min(ceiling, max(32 * 1024 * 1024, req)))


# --------------------------------------------------------------------------- #
# Averaging matrix: folds edge-replicated padding + 1/kernel_size into (L, L).
# --------------------------------------------------------------------------- #
def _avg_matrix(seq_len, kernel_size):
    pad = (kernel_size - 1) // 2
    w = np.zeros((seq_len, seq_len), np.float64)
    for l in range(seq_len):
        for off in range(-pad, pad + 1):
            w[l, min(max(l + off, 0), seq_len - 1)] += 1.0
    return jnp.asarray(w / float(kernel_size), dtype=jnp.float32)


# --------------------------------------------------------------------------- #
# Kernel
# --------------------------------------------------------------------------- #
def _decomp_kernel(w_ref, x_ref, res_ref, mean_ref, *, bb):
    """Block (bb, L, cb): per series, mean = W @ x_b (MXU, f32); res = x - mean."""

    def one(b):
        xb = x_ref[b].astype(jnp.float32)                         # (L, cb)
        mean = jnp.dot(w_ref[...], xb,
                       preferred_element_type=jnp.float32)        # (L, cb)
        mean_ref[b] = mean.astype(mean_ref.dtype)
        res_ref[b] = (xb - mean).astype(res_ref.dtype)

    if bb <= 8:
        for b in range(bb):          # short static unroll
            one(b)
    else:
        def body(b, carry):
            one(b)
            return carry
        jax.lax.fori_loop(0, bb, body, 0)


# --------------------------------------------------------------------------- #
# Tiling choice
# --------------------------------------------------------------------------- #
def _choose_tiles(B, L, C, block_elems, num_cores):
    # Channel tile: full C when it fits (or cannot be 128-tiled); otherwise the
    # largest multiple-of-128 divisor of C whose (L, cb) slab fits the budget.
    if L * C <= block_elems or C % 128 != 0:
        cb = C
        # TODO(synk): time-tiled (halo-read) fallback for L*C far beyond the
        # block budget with C % 128 != 0; TimeMixer shapes never hit this.
    else:
        cb = 128
        m = 256
        while m <= C:
            if C % m == 0 and L * m <= block_elems:
                cb = m
            m += 128
    n_ct = C // cb

    # Batch tile: largest divisor of B that fits the budget.  Only on
    # multi-TensorCore parts do we force >=2 (preferably even) grid steps.
    cap = max(1, block_elems // max(1, L * cb))
    split = num_cores >= 2 and n_ct == 1 and B >= 2
    if split:
        cap = min(cap, max(1, B // 2))
    divs = [d for d in range(1, B + 1) if B % d == 0 and d <= cap]
    bb = divs[-1]
    if split:
        even = [d for d in divs if (B // d) % 2 == 0]
        if even:
            bb = even[-1]
    return bb, cb


# --------------------------------------------------------------------------- #
# Public entry point
# --------------------------------------------------------------------------- #
def series_decomp(x, kernel_size, *, block_elems=None):
    """x: (B, L, C). Returns (res, moving_mean), both (B, L, C)."""
    if kernel_size % 2 != 1:
        raise ValueError("series_decomp (TimeMixer) assumes an odd kernel_size")
    B, L, C = x.shape
    itemsize = jnp.dtype(x.dtype).itemsize
    if block_elems is None:
        block_elems = _default_block_elems()

    # TODO(synk): for very large L (W = L*L*4 bytes approaching VMEM) a banded-W
    # / time-tiled variant would be needed; TimeMixer sequence lengths (<=720)
    # keep W at <= ~2 MiB.
    bb, cb = _choose_tiles(B, L, C, block_elems, _num_tensorcores())
    G, CT = B // bb, C // cb

    w = _avg_matrix(L, kernel_size)

    kernel = functools.partial(_decomp_kernel, bb=bb)
    w_spec = pl.BlockSpec((L, L), lambda g, c: (0, 0))      # resident, fetched once
    x_spec = pl.BlockSpec((bb, L, cb), lambda g, c: (g, 0, c))

    cost = pl.CostEstimate(
        flops=2 * kernel_size * B * L * C,
        transcendentals=0,
        bytes_accessed=3 * B * L * C * itemsize + L * L * 4,
    )

    res, mean = pl.pallas_call(
        kernel,
        out_shape=(
            jax.ShapeDtypeStruct((B, L, C), x.dtype),
            jax.ShapeDtypeStruct((B, L, C), x.dtype),
        ),
        grid_spec=pltpu.PrefetchScalarGridSpec(
            num_scalar_prefetch=0,
            grid=(G, CT),
            in_specs=[w_spec, x_spec],
            out_specs=[x_spec, x_spec],
        ),
        compiler_params=pltpu.CompilerParams(
            dimension_semantics=("parallel", "parallel"),
            vmem_limit_bytes=_vmem_limit_bytes(bb, L, cb, itemsize),
        ),
        cost_estimate=cost,
    )(w, x)
    return res, mean


# --------------------------------------------------------------------------- #
# Pure-JAX reference (matches the PyTorch module)
# --------------------------------------------------------------------------- #
def _reference(x, kernel_size):
    pad = (kernel_size - 1) // 2
    x_pad = jnp.pad(x, ((0, 0), (pad, pad), (0, 0)), mode="edge")
    L = x.shape[1]
    windows = jnp.stack([x_pad[:, i:i + L, :] for i in range(kernel_size)], axis=0)
    mean = jnp.mean(windows, axis=0)
    return x - mean, mean


if __name__ == "__main__":
    key = jax.random.PRNGKey(0)
    k1, k2, k3 = jax.random.split(key, 3)

    # Case 1: typical small-channel TimeMixer shape (single block, MXU path).
    x1 = jax.random.normal(k1, (2, 16, 8), dtype=jnp.float32)
    res1, mean1 = series_decomp(x1, 5)
    jax.block_until_ready((res1, mean1))
    r_ref1, m_ref1 = _reference(x1, 5)
    assert jnp.allclose(res1, r_ref1, atol=1e-5, rtol=1e-5)
    assert jnp.allclose(mean1, m_ref1, atol=1e-5, rtol=1e-5)

    # Case 2: wide channels + tiny block budget -> channel-tiled grid (cb=128),
    # kernel_size=25 exercises the folded edge-replication weights.
    x2 = jax.random.normal(k2, (2, 16, 256), dtype=jnp.float32)
    res2, mean2 = series_decomp(x2, 25, block_elems=2048)
    jax.block_until_ready((res2, mean2))
    r_ref2, m_ref2 = _reference(x2, 25)
    assert jnp.allclose(res2, r_ref2, atol=1e-5, rtol=1e-5)
    assert jnp.allclose(mean2, m_ref2, atol=1e-5, rtol=1e-5)

    # Case 3: several batch elements per block (in-kernel bb loop), odd C.
    x3 = jax.random.normal(k3, (4, 24, 7), dtype=jnp.float32)
    res3, mean3 = series_decomp(x3, 25)
    jax.block_until_ready((res3, mean3))
    r_ref3, m_ref3 = _reference(x3, 25)
    assert jnp.allclose(res3, r_ref3, atol=1e-5, rtol=1e-5)
    assert jnp.allclose(mean3, m_ref3, atol=1e-5, rtol=1e-5)

    print("KERNEL_OK")
</pallas_src>

<mosaic_0001>
module attributes {stable_mosaic.version = 11 : i64} {
  func.func @_decomp_kernel(%arg0: i32, %arg1: i32, %arg2: memref<16x16xf32, #tpu.memory_space<vmem>>, %arg3: memref<2x16x8xf32, #tpu.memory_space<vmem>>, %arg4: memref<2x16x8xf32, #tpu.memory_space<vmem>>, %arg5: memref<2x16x8xf32, #tpu.memory_space<vmem>>) attributes {dimension_semantics = [#tpu.dimension_semantics<parallel>, #tpu.dimension_semantics<parallel>], iteration_bounds = array<i64: 1, 1>, scalar_prefetch = 0 : i64, scratch_operands = 0 : i64, tpu.core_type = #tpu.core_type<tc>, window_params = [{pipeline_mode = #tpu.pipeline_mode<synchronous>, transform_indices = @transform_0, window_bounds = array<i64: 16, 16>}, {transform_indices = @transform_1, window_bounds = array<i64: 2, 16, 8>}, {transform_indices = @transform_2, window_bounds = array<i64: 2, 16, 8>}, {transform_indices = @transform_3, window_bounds = array<i64: 2, 16, 8>}]} {
    %c0 = arith.constant 0 : index
    %c0_0 = arith.constant 0 : index
    %c0_1 = arith.constant 0 : index
    %0 = vector.load %arg3[%c0, %c0_0, %c0_1] : memref<2x16x8xf32, #tpu.memory_space<vmem>>, vector<1x16x8xf32>
    %1 = vector.shape_cast %0 : vector<1x16x8xf32> to vector<16x8xf32>
    %c0_2 = arith.constant 0 : index
    %c0_3 = arith.constant 0 : index
    %2 = vector.load %arg2[%c0_2, %c0_3] : memref<16x16xf32, #tpu.memory_space<vmem>>, vector<16x16xf32>
    %cst = arith.constant dense<0.000000e+00> : vector<16x8xf32>
    %3 = tpu.matmul %2, %1, %cst {dimension_numbers = #tpu.dot_dimension_numbers<[1], [0], [0], [1], [0, 0, 1, 1], [], []>} : vector<16x16xf32>, vector<16x8xf32>, vector<16x8xf32> -> vector<16x8xf32>
    %c0_4 = arith.constant 0 : index
    %c0_5 = arith.constant 0 : index
    %c0_6 = arith.constant 0 : index
    %4 = vector.load %arg5[%c0_4, %c0_5, %c0_6] : memref<2x16x8xf32, #tpu.memory_space<vmem>>, vector<1x16x8xf32>
    %5 = vector.shape_cast %4 : vector<1x16x8xf32> to vector<16x8xf32>
    %6 = vector.shape_cast %3 : vector<16x8xf32> to vector<1x16x8xf32>
    tpu.vector_store %arg5[%c0_4, %c0_5, %c0_6], %6 {strides = array<i32>} : memref<2x16x8xf32, #tpu.memory_space<vmem>>, vector<1x16x8xf32>,
    %7 = arith.subf %1, %3 : vector<16x8xf32>
    %c0_7 = arith.constant 0 : index
    %c0_8 = arith.constant 0 : index
    %c0_9 = arith.constant 0 : index
    %8 = vector.load %arg4[%c0_7, %c0_8, %c0_9] : memref<2x16x8xf32, #tpu.memory_space<vmem>>, vector<1x16x8xf32>
    %9 = vector.shape_cast %8 : vector<1x16x8xf32> to vector<16x8xf32>
    %10 = vector.shape_cast %7 : vector<16x8xf32> to vector<1x16x8xf32>
    tpu.vector_store %arg4[%c0_7, %c0_8, %c0_9], %10 {strides = array<i32>} : memref<2x16x8xf32, #tpu.memory_space<vmem>>, vector<1x16x8xf32>,
    %c1 = arith.constant 1 : index
    %c0_10 = arith.constant 0 : index
    %c0_11 = arith.constant 0 : index
    %11 = vector.load %arg3[%c1, %c0_10, %c0_11] : memref<2x16x8xf32, #tpu.memory_space<vmem>>, vector<1x16x8xf32>
    %12 = vector.shape_cast %11 : vector<1x16x8xf32> to vector<16x8xf32>
    %c0_12 = arith.constant 0 : index
    %c0_13 = arith.constant 0 : index
    %13 = vector.load %arg2[%c0_12, %c0_13] : memref<16x16xf32, #tpu.memory_space<vmem>>, vector<16x16xf32>
    %cst_14 = arith.constant dense<0.000000e+00> : vector<16x8xf32>
    %14 = tpu.matmul %13, %12, %cst_14 {dimension_numbers = #tpu.dot_dimension_numbers<[1], [0], [0], [1], [0, 0, 1, 1], [], []>} : vector<16x16xf32>, vector<16x8xf32>, vector<16x8xf32> -> vector<16x8xf32>
    %c1_15 = arith.constant 1 : index
    %c0_16 = arith.constant 0 : index
    %c0_17 = arith.constant 0 : index
    %15 = vector.load %arg5[%c1_15, %c0_16, %c0_17] : memref<2x16x8xf32, #tpu.memory_space<vmem>>, vector<1x16x8xf32>
    %16 = vector.shape_cast %15 : vector<1x16x8xf32> to vector<16x8xf32>
    %17 = vector.shape_cast %14 : vector<16x8xf32> to vector<1x16x8xf32>
    tpu.vector_store %arg5[%c1_15, %c0_16, %c0_17], %17 {strides = array<i32>} : memref<2x16x8xf32, #tpu.memory_space<vmem>>, vector<1x16x8xf32>,
    %18 = arith.subf %12, %14 : vector<16x8xf32>
    %c1_18 = arith.constant 1 : index
    %c0_19 = arith.constant 0 : index
    %c0_20 = arith.constant 0 : index
    %19 = vector.load %arg4[%c1_18, %c0_19, %c0_20] : memref<2x16x8xf32, #tpu.memory_space<vmem>>, vector<1x16x8xf32>
    %20 = vector.shape_cast %19 : vector<1x16x8xf32> to vector<16x8xf32>
    %21 = vector.shape_cast %18 : vector<16x8xf32> to vector<1x16x8xf32>
    tpu.vector_store %arg4[%c1_18, %c0_19, %c0_20], %21 {strides = array<i32>} : memref<2x16x8xf32, #tpu.memory_space<vmem>>, vector<1x16x8xf32>,
    return
  }
  func.func @transform_0(%arg0: i32, %arg1: i32) -> (i32, i32) {
    %c0_i32 = arith.constant 0 : i32
    %c0_i32_0 = arith.constant 0 : i32
    %c0_i32_1 = arith.constant 0 : i32
    return %c0_i32, %c0_i32_0 : i32, i32
  }
  func.func @transform_1(%arg0: i32, %arg1: i32) -> (i32, i32, i32) {
    %c0_i32 = arith.constant 0 : i32
    %c0_i32_0 = arith.constant 0 : i32
    return %arg0, %c0_i32, %arg1 : i32, i32, i32
  }
  func.func @transform_2(%arg0: i32, %arg1: i32) -> (i32, i32, i32) {
    %c0_i32 = arith.constant 0 : i32
    %c0_i32_0 = arith.constant 0 : i32
    return %arg0, %c0_i32, %arg1 : i32, i32, i32
  }
  func.func @transform_3(%arg0: i32, %arg1: i32) -> (i32, i32, i32) {
    %c0_i32 = arith.constant 0 : i32
    %c0_i32_0 = arith.constant 0 : i32
    return %arg0, %c0_i32, %arg1 : i32, i32, i32
  }
}

</mosaic_0001>

<bundles_post_ra>
// kernel: tpu_custom_call.1
= control target key start
LH: loop header
LB: loop body
LE: loop exit
PB: predicated region body
PF: predicated region fallthrough
CT: control target
= control target key end

     0   :  { %vm17_vm0 = vcmask 130048   ;;  %vm99_vm1 = vcmask 64512   ;;  %s322_s1 = inlined_call_operand.vmem [shape: f32[2,16,8], index: 1, kind: input, shape index: {}]   ;;  %s323_s0 = inlined_call_operand.vmem [shape: f32[16,16], index: 0, kind: input, shape index: {}]   ;;  %s324_s3 = inlined_call_operand.vmem [shape: f32[2,16,8], index: 3, kind: output, shape index: {1}]   ;;  %s325_s2 = inlined_call_operand.vmem [shape: f32[2,16,8], index: 2, kind: output, shape index: {0}]  }
   0x1   :  { %v13_v0 = vld [vmem:[%s322_s1] sm:$0xff]  ;;  %v14_v1 = vld [vmem:[%s322_s1 + $0x8] sm:$0xff]  ;;  %v210_v2 = vld [vmem:[%s322_s1 + $0x10] sm:$0xff] }
   0x2   :  { %v240_v3 = vpack.c.bf16 %v14_v1, %v13_v0  ;;  %v211_v4 = vld [vmem:[%s322_s1 + $0x18] sm:$0xff]  ;;  %v15_v5 = vld [vmem:[%s323_s0] sm:$0xff]  ;;  %v16_v7 = vld [vmem:[%s323_s0 + $0x8] sm:$0xff] }
   0x3   :  { %v244_v6 = vpack.c.bf16 %v211_v4, %v210_v2  ;;  %230 = vmatprep.mubr.msk.f32.mxu0 %vm17_vm0, %v15_v5  ;;  %237 = vmatprep.mubr.msk.f32.mxu1 %vm17_vm0, %v15_v5 }
   0x4   :  { %241 = vmatprep.subr.bf16.mxu0 %v240_v3 }
   0x5   :  { %245 = vmatprep.subr.bf16.mxu1 %v244_v6  ;;  %243 = vmatpush3.bf16.msra.mxu0 %v240_v3 }
   0x6   :  { %247 = vmatpush3.bf16.msra.mxu1 %v244_v6 }
   0x8   :  { %231 = vmatmul.mubr.msk.f32.vlgmr.msra.gmra.mrb[0].mxu0 %vm17_vm0, %v16_v7 }
   0x9   :  { %238 = vmatmul.mubr.msk.f32.vlgmr.msra.gmra.mrb[0].mxu1 %vm17_vm0, %v16_v7 }
  0xdb   :  { %v232_v8 = vpop.f32.mrb[0].mxu0 }
  0xdc   :  { %101 = vst.msk [vmem:[%s324_s3 + $0x8] sm:$0xff] %vm99_vm1, %v232_v8  ;;  %v103_v9 = vsub.f32 %v14_v1, %v232_v8  ;;  %v239_v10 = vpop.f32.mrb[0].mxu1  ;;  %v90_v11 = vpop.f32.mrb[1].mxu0 }
  0xdd   :  { %215 = vst.msk [vmem:[%s324_s3 + $0x18] sm:$0xff] %vm99_vm1, %v239_v10  ;;  %v196_v12 = vsub.f32 %v211_v4, %v239_v10  ;;  %100 = vst.msk [vmem:[%s324_s3] sm:$0xff] %vm99_vm1, %v90_v11  ;;  %v102_v13 = vsub.f32 %v13_v0, %v90_v11  ;;  %v183_v14 = vpop.f32.mrb[1].mxu1 }
  0xde   :  { %105 = vst.msk [vmem:[%s325_s2 + $0x8] sm:$0xff] %vm99_vm1, %v103_v9  ;;  %214 = vst.msk [vmem:[%s324_s3 + $0x10] sm:$0xff] %vm99_vm1, %v183_v14  ;;  %v195_v15 = vsub.f32 %v210_v2, %v183_v14 }
  0xdf   :  { %217 = vst.msk [vmem:[%s325_s2 + $0x18] sm:$0xff] %vm99_vm1, %v196_v12  ;;  %104 = vst.msk [vmem:[%s325_s2] sm:$0xff] %vm99_vm1, %v102_v13 }
  0xe0   :  { %216 = vst.msk [vmem:[%s325_s2 + $0x10] sm:$0xff] %vm99_vm1, %v195_v15 }

</bundles_post_ra>
